<compile_context>
chip_gen: v7x
topology: tpu7x:2x2x1
jax: 0.10.0
libtpu: 0.0.40
codegen_flags: <defaults>
</compile_context>

<pallas_src>
import jax
import jax.numpy as jnp
from jax.experimental import pallas as pl
from jax.experimental.pallas import tpu as pltpu

D_IN, D_H1, D_H2, D_OUT = 28 * 28, 300, 100, 10


def _round_up(n, m):
    return ((n + m - 1) // m) * m


P_H1 = _round_up(D_H1, 128)    # 384
P_H2 = _round_up(D_H2, 128)    # 128
P_OUT = _round_up(D_OUT, 128)  # 128


def lenet300_kernel(x_ref, w1_ref, b1_ref, w2_ref, b2_ref, w3_ref, b3_ref, out_ref):
    # x_ref: [TB, 784] f32 (cast to bf16 in-kernel); w*: [in, out_p] bf16;
    # b*: [1, out_p] f32; out_ref: [TB, 128] f32.
    x = x_ref[...].astype(jnp.bfloat16)                         # in-kernel cast (VPU)
    h1 = jnp.dot(x, w1_ref[...], preferred_element_type=jnp.float32)
    h1 = jnp.maximum(h1 + b1_ref[...], 0.0)                     # fc1: f32 bias + ReLU
    h2 = jnp.dot(h1.astype(jnp.bfloat16), w2_ref[...],
                 preferred_element_type=jnp.float32)
    h2 = jnp.maximum(h2 + b2_ref[...], 0.0)                     # fc2: f32 bias + ReLU
    h3 = jnp.dot(h2.astype(jnp.bfloat16), w3_ref[...],
                 preferred_element_type=jnp.float32)
    out_ref[...] = (h3 + b3_ref[...]).astype(out_ref.dtype)     # fc3 (no activation)


def prepare_params(params):
    """Zero-pad output feature dims to multiples of 128; weights -> bf16, biases -> f32.

    Zero padding is exact: padded weight columns / bias lanes are zero, so padded
    activation lanes stay exactly zero through the ReLUs and contribute nothing to
    the real logits.  w1 keeps its true 784 input rows (no row padding needed).
    """
    w1, b1, w2, b2, w3, b3 = params

    def pad_w(w, p_in, p_out):
        w = jnp.pad(w, ((0, p_in - w.shape[0]), (0, p_out - w.shape[1])))
        return w.astype(jnp.bfloat16)

    def pad_b(b, p_out):
        return jnp.pad(b, ((0, 0), (0, p_out - b.shape[1]))).astype(jnp.float32)

    return (pad_w(w1, D_IN, P_H1), pad_b(b1, P_H1),
            pad_w(w2, P_H1, P_H2), pad_b(b2, P_H2),
            pad_w(w3, P_H2, P_OUT), pad_b(b3, P_OUT))


def lenet300_forward(x_nchw, padded_params, *, block_b=2048):
    """x_nchw: [B, 1, 28, 28] float32.  Returns logits [B, 10] float32."""
    w1, b1, w2, b2, w3, b3 = padded_params
    B = x_nchw.shape[0]

    # Flatten only (same as torch x.view(x.size(0), -1)).  No pad, no cast:
    # the bf16 cast happens inside the kernel, so x is read from HBM exactly once.
    x = x_nchw.reshape(B, D_IN)

    # Batch tile: multiple of 16 sublanes, capped at block_b, and sized so the
    # grid has >=2 steps whenever B is big enough (v7x megacore split).
    tb = min(block_b, _round_up(pl.cdiv(B, 2), 16))
    grid_b = pl.cdiv(B, tb)  # ragged tail block is masked by Pallas; no batch padding

    param_bytes = sum(int(a.size) * a.dtype.itemsize for a in (w1, b1, w2, b2, w3, b3))
    cost = pl.CostEstimate(
        flops=2 * B * (D_IN * D_H1 + D_H1 * D_H2 + D_H2 * D_OUT),
        transcendentals=0,
        bytes_accessed=int(x.size) * x.dtype.itemsize + B * P_OUT * 4 + param_bytes,
    )

    out = pl.pallas_call(
        lenet300_kernel,
        out_shape=jax.ShapeDtypeStruct((B, P_OUT), jnp.float32),
        grid=(grid_b,),
        in_specs=[
            pl.BlockSpec((tb, D_IN), lambda i: (i, 0)),     # x: tiled over batch
            pl.BlockSpec(w1.shape, lambda i: (0, 0)),       # weights/biases resident
            pl.BlockSpec(b1.shape, lambda i: (0, 0)),
            pl.BlockSpec(w2.shape, lambda i: (0, 0)),
            pl.BlockSpec(b2.shape, lambda i: (0, 0)),
            pl.BlockSpec(w3.shape, lambda i: (0, 0)),
            pl.BlockSpec(b3.shape, lambda i: (0, 0)),
        ],
        out_specs=pl.BlockSpec((tb, P_OUT), lambda i: (i, 0)),
        compiler_params=pltpu.CompilerParams(
            dimension_semantics=("parallel",),              # split batch across TCs
            vmem_limit_bytes=48 * 1024 * 1024,              # TB=2048 f32-x fits easily
        ),
        cost_estimate=cost,
    )(x, w1, b1, w2, b2, w3, b3)

    # Lane-dense 128-wide output from the kernel; the cheap slice to 10 logits is
    # left here so XLA can fuse it with the consumer.
    return out[:, :D_OUT]


def xavier_uniform(key, fan_in, fan_out):
    # nn.init.xavier_uniform_ : U(-a, a), a = sqrt(6 / (fan_in + fan_out)).
    # Returned in [in, out] layout (== PyTorch weight[out, in].T) so x @ W + b
    # matches F.linear semantics exactly.
    a = jnp.sqrt(6.0 / (fan_in + fan_out))
    return jax.random.uniform(key, (fan_in, fan_out), jnp.float32, minval=-a, maxval=a)


def init_params(key):
    k1, k2, k3 = jax.random.split(key, 3)
    w1 = xavier_uniform(k1, D_IN, D_H1)
    w2 = xavier_uniform(k2, D_H1, D_H2)
    w3 = xavier_uniform(k3, D_H2, D_OUT)
    # CustomLinearLayer biases: deterministic zeros (synthetic init, not a checkpoint)
    b1 = jnp.zeros((1, D_H1), jnp.float32)
    b2 = jnp.zeros((1, D_H2), jnp.float32)
    b3 = jnp.zeros((1, D_OUT), jnp.float32)
    return (w1, b1, w2, b2, w3, b3)


def reference_forward(x_nchw, params):
    """Pure-JAX reference with the same numerics (bf16 operands, f32 accumulation)."""
    w1, b1, w2, b2, w3, b3 = params
    bf = jnp.bfloat16
    x = x_nchw.reshape(x_nchw.shape[0], -1).astype(bf)
    h1 = jnp.maximum(jnp.dot(x, w1.astype(bf), preferred_element_type=jnp.float32) + b1, 0.0)
    h2 = jnp.maximum(jnp.dot(h1.astype(bf), w2.astype(bf),
                             preferred_element_type=jnp.float32) + b2, 0.0)
    return jnp.dot(h2.astype(bf), w3.astype(bf), preferred_element_type=jnp.float32) + b3


if __name__ == "__main__":
    key = jax.random.PRNGKey(0)
    kx, kp = jax.random.split(key)

    B = 2
    x = jax.random.normal(kx, (B, 1, 28, 28), jnp.float32)  # NCHW like PyTorch
    params = init_params(kp)
    padded_params = prepare_params(params)  # pad + cast once, reuse every call

    out = lenet300_forward(x, padded_params)
    out = jax.block_until_ready(out)

    ref = reference_forward(x, params)
    assert out.shape == (B, 10)
    assert jnp.allclose(out, ref, atol=1e-3, rtol=1e-3)

    print("KERNEL_OK")
</pallas_src>

<mosaic_0001>
module attributes {stable_mosaic.version = 11 : i64} {
  func.func @lenet300_kernel(%arg0: i32, %arg1: memref<16x784xf32, #tpu.memory_space<vmem>>, %arg2: memref<784x384xbf16, #tpu.memory_space<vmem>>, %arg3: memref<1x384xf32, #tpu.memory_space<vmem>>, %arg4: memref<384x128xbf16, #tpu.memory_space<vmem>>, %arg5: memref<1x128xf32, #tpu.memory_space<vmem>>, %arg6: memref<128x128xbf16, #tpu.memory_space<vmem>>, %arg7: memref<1x128xf32, #tpu.memory_space<vmem>>, %arg8: memref<16x128xf32, #tpu.memory_space<vmem>>) attributes {dimension_semantics = [#tpu.dimension_semantics<parallel>], iteration_bounds = array<i64: 1>, scalar_prefetch = 0 : i64, scratch_operands = 0 : i64, tpu.core_type = #tpu.core_type<tc>, window_params = [{transform_indices = @transform_0, window_bounds = array<i64: 16, 784>}, {pipeline_mode = #tpu.pipeline_mode<synchronous>, transform_indices = @transform_1, window_bounds = array<i64: 784, 384>}, {pipeline_mode = #tpu.pipeline_mode<synchronous>, transform_indices = @transform_2, window_bounds = array<i64: 1, 384>}, {pipeline_mode = #tpu.pipeline_mode<synchronous>, transform_indices = @transform_3, window_bounds = array<i64: 384, 128>}, {pipeline_mode = #tpu.pipeline_mode<synchronous>, transform_indices = @transform_4, window_bounds = array<i64: 1, 128>}, {pipeline_mode = #tpu.pipeline_mode<synchronous>, transform_indices = @transform_5, window_bounds = array<i64: 128, 128>}, {pipeline_mode = #tpu.pipeline_mode<synchronous>, transform_indices = @transform_6, window_bounds = array<i64: 1, 128>}, {transform_indices = @transform_7, window_bounds = array<i64: 16, 128>}]} {
    %c0 = arith.constant 0 : index
    %c0_0 = arith.constant 0 : index
    %0 = vector.load %arg1[%c0, %c0_0] : memref<16x784xf32, #tpu.memory_space<vmem>>, vector<16x784xf32>
    %1 = arith.truncf %0 : vector<16x784xf32> to vector<16x784xbf16>
    %c0_1 = arith.constant 0 : index
    %c0_2 = arith.constant 0 : index
    %2 = vector.load %arg2[%c0_1, %c0_2] : memref<784x384xbf16, #tpu.memory_space<vmem>>, vector<784x384xbf16>
    %cst = arith.constant dense<0.000000e+00> : vector<16x384xf32>
    %3 = tpu.matmul %1, %2, %cst {dimension_numbers = #tpu.dot_dimension_numbers<[1], [0], [0], [1], [0, 0, 1, 1], [], []>} : vector<16x784xbf16>, vector<784x384xbf16>, vector<16x384xf32> -> vector<16x384xf32>
    %c0_3 = arith.constant 0 : index
    %c0_4 = arith.constant 0 : index
    %4 = vector.load %arg3[%c0_3, %c0_4] : memref<1x384xf32, #tpu.memory_space<vmem>>, vector<1x384xf32>
    %5 = vector.broadcast %4 : vector<1x384xf32> to vector<16x384xf32>
    %6 = arith.addf %3, %5 : vector<16x384xf32>
    %cst_5 = arith.constant 0.000000e+00 : f32
    %7 = vector.broadcast %cst_5 : f32 to vector<16x384xf32>
    %8 = arith.maximumf %6, %7 : vector<16x384xf32>
    %9 = arith.truncf %8 : vector<16x384xf32> to vector<16x384xbf16>
    %c0_6 = arith.constant 0 : index
    %c0_7 = arith.constant 0 : index
    %10 = vector.load %arg4[%c0_6, %c0_7] : memref<384x128xbf16, #tpu.memory_space<vmem>>, vector<384x128xbf16>
    %cst_8 = arith.constant dense<0.000000e+00> : vector<16x128xf32>
    %11 = tpu.matmul %9, %10, %cst_8 {dimension_numbers = #tpu.dot_dimension_numbers<[1], [0], [0], [1], [0, 0, 1, 1], [], []>} : vector<16x384xbf16>, vector<384x128xbf16>, vector<16x128xf32> -> vector<16x128xf32>
    %c0_9 = arith.constant 0 : index
    %c0_10 = arith.constant 0 : index
    %12 = vector.load %arg5[%c0_9, %c0_10] : memref<1x128xf32, #tpu.memory_space<vmem>>, vector<1x128xf32>
    %13 = vector.broadcast %12 : vector<1x128xf32> to vector<16x128xf32>
    %14 = arith.addf %11, %13 : vector<16x128xf32>
    %cst_11 = arith.constant 0.000000e+00 : f32
    %15 = vector.broadcast %cst_11 : f32 to vector<16x128xf32>
    %16 = arith.maximumf %14, %15 : vector<16x128xf32>
    %17 = arith.truncf %16 : vector<16x128xf32> to vector<16x128xbf16>
    %c0_12 = arith.constant 0 : index
    %c0_13 = arith.constant 0 : index
    %18 = vector.load %arg6[%c0_12, %c0_13] : memref<128x128xbf16, #tpu.memory_space<vmem>>, vector<128x128xbf16>
    %cst_14 = arith.constant dense<0.000000e+00> : vector<16x128xf32>
    %19 = tpu.matmul %17, %18, %cst_14 {dimension_numbers = #tpu.dot_dimension_numbers<[1], [0], [0], [1], [0, 0, 1, 1], [], []>} : vector<16x128xbf16>, vector<128x128xbf16>, vector<16x128xf32> -> vector<16x128xf32>
    %c0_15 = arith.constant 0 : index
    %c0_16 = arith.constant 0 : index
    %20 = vector.load %arg7[%c0_15, %c0_16] : memref<1x128xf32, #tpu.memory_space<vmem>>, vector<1x128xf32>
    %21 = vector.broadcast %20 : vector<1x128xf32> to vector<16x128xf32>
    %22 = arith.addf %19, %21 : vector<16x128xf32>
    %c0_17 = arith.constant 0 : index
    %c0_18 = arith.constant 0 : index
    %23 = vector.load %arg8[%c0_17, %c0_18] : memref<16x128xf32, #tpu.memory_space<vmem>>, vector<16x128xf32>
    tpu.vector_store %arg8[%c0_17, %c0_18], %22 {strides = array<i32>} : memref<16x128xf32, #tpu.memory_space<vmem>>, vector<16x128xf32>,
    return
  }
  func.func @transform_0(%arg0: i32) -> (i32, i32) {
    %c0_i32 = arith.constant 0 : i32
    %c0_i32_0 = arith.constant 0 : i32
    return %arg0, %c0_i32 : i32, i32
  }
  func.func @transform_1(%arg0: i32) -> (i32, i32) {
    %c0_i32 = arith.constant 0 : i32
    %c0_i32_0 = arith.constant 0 : i32
    %c0_i32_1 = arith.constant 0 : i32
    return %c0_i32, %c0_i32_0 : i32, i32
  }
  func.func @transform_2(%arg0: i32) -> (i32, i32) {
    %c0_i32 = arith.constant 0 : i32
    %c0_i32_0 = arith.constant 0 : i32
    %c0_i32_1 = arith.constant 0 : i32
    return %c0_i32, %c0_i32_0 : i32, i32
  }
  func.func @transform_3(%arg0: i32) -> (i32, i32) {
    %c0_i32 = arith.constant 0 : i32
    %c0_i32_0 = arith.constant 0 : i32
    %c0_i32_1 = arith.constant 0 : i32
    return %c0_i32, %c0_i32_0 : i32, i32
  }
  func.func @transform_4(%arg0: i32) -> (i32, i32) {
    %c0_i32 = arith.constant 0 : i32
    %c0_i32_0 = arith.constant 0 : i32
    %c0_i32_1 = arith.constant 0 : i32
    return %c0_i32, %c0_i32_0 : i32, i32
  }
  func.func @transform_5(%arg0: i32) -> (i32, i32) {
    %c0_i32 = arith.constant 0 : i32
    %c0_i32_0 = arith.constant 0 : i32
    %c0_i32_1 = arith.constant 0 : i32
    return %c0_i32, %c0_i32_0 : i32, i32
  }
  func.func @transform_6(%arg0: i32) -> (i32, i32) {
    %c0_i32 = arith.constant 0 : i32
    %c0_i32_0 = arith.constant 0 : i32
    %c0_i32_1 = arith.constant 0 : i32
    return %c0_i32, %c0_i32_0 : i32, i32
  }
  func.func @transform_7(%arg0: i32) -> (i32, i32) {
    %c0_i32 = arith.constant 0 : i32
    %c0_i32_0 = arith.constant 0 : i32
    return %arg0, %c0_i32 : i32, i32
  }
}

</mosaic_0001>

<bundles_post_ra>
// kernel: tpu_custom_call.1
= control target key start
LH: loop header
LB: loop body
LE: loop exit
PB: predicated region body
PF: predicated region fallthrough
CT: control target
= control target key end

     0   :  { %12 = vsyncpa [#allocation3], 0  ;;  %s3000_s0 = inlined_call_operand.hbm [shape: f32[2,784], index: 0, kind: input, shape index: {}]   ;;  %s3001_s1 = inlined_call_operand.hbm [shape: bf16[784,384], index: 1, kind: input, shape index: {}]   ;;  %s3002_s2 = inlined_call_operand.vmem [shape: f32[1,384], index: 2, kind: input, shape index: {}]   ;;  %s3003_s3 = inlined_call_operand.hbm [shape: bf16[384,128], index: 3, kind: input, shape index: {}]   ;;  %s3004_s4 = inlined_call_operand.vmem [shape: f32[1,128], index: 4, kind: input, shape index: {}]   ;;  %s3005_s5 = inlined_call_operand.hbm [shape: bf16[128,128], index: 5, kind: input, shape index: {}]   ;;  %s3006_s6 = inlined_call_operand.vmem [shape: f32[1,128], index: 6, kind: input, shape index: {}]   ;;  %s3007_s7 = inlined_call_operand.hbm [shape: f32[2,128], index: 7, kind: output, shape index: {}]  }
   0x1   :  { %13 = vsyncpa [#allocation6], 0 }
   0x2   :  { %14 = vsyncpa [#allocation9], 0 }
   0x3   :  { %15 = vsyncpa [#allocation4], 0 }
   0x4   :  { %20 = vsyncadd [#allocation3], 1568  ;;  %s2781_s24 = smov [#allocation5]   ;;  %s2663_s28 = scalar_lea.hbm %s3001_s1, 18816 }
   0x5   :  { %s33_s25 = sshll.u32 %s2781_s24, 4  ;;  %p2664_p0 = scmp.ne.s32.totalorder %s3001_s1, %s2663_s28  ;;  %s34_s25 = int_to_ptr.vmem [resolvable:$true] %s33_s25 }
   0x6   :  { %p2667_p1 = scmp.lt.u32.totalorder %s2663_s28, %s3001_s1 }
   0x8   :  { %p2669_p2 = pnand %p2667_p1, %p2664_p0 }
   0xa   :  { %2672 = shalt.err (!%p2669_p2)
}
   0xb   :  { %s2673_s10 = scalar_lea.vmem %s34_s25, 18816  ;;  %p2678_p4 = scmp.lt.s32.totalorder %s34_s25, %s34_s25 }
   0xc   :  { %p2674_p3 = scmp.ne.s32.totalorder %s34_s25, %s2673_s10  ;;  %p2679_p5 = scmp.lt.s32.totalorder %s2673_s10, %s2673_s10 }
   0xe   :  { %p2680_p6 = por %p2679_p5, %p2678_p4 }
  0x10   :  { %p2681_p7 = pnand %p2680_p6, %p2674_p3 }
  0x12   :  { %2684 = shalt.err (!%p2681_p7)
}
  0x13   :  { %s2782_s11 = smov 192   ;;  %s2783_s12 = smov 12  }
  0x14   :  { %39 = dma.hbm_to_vmem [thread:$0]  %s3001_s1, 18816, %s34_s25, [#allocation6], %s2782_s11, %s2782_s11, %s2783_s12  }
  0x15   :  { %s2784_s15 = smov [#allocation2]   ;;  %s2685_s19 = scalar_lea.hbm %s3000_s0, 224 }
  0x16   :  { %s21_s16 = sshll.u32 %s2784_s15, 4  ;;  %p2686_p8 = scmp.ne.s32.totalorder %s3000_s0, %s2685_s19  ;;  %s22_s16 = int_to_ptr.vmem [resolvable:$true] %s21_s16 }
  0x17   :  { %p2689_p9 = scmp.lt.u32.totalorder %s2685_s19, %s3000_s0 }
  0x19   :  { %p2691_p10 = pnand %p2689_p9, %p2686_p8 }
  0x1b   :  { %2694 = shalt.err (!%p2691_p10)
}
  0x1c   :  { %s2695_s24 = scalar_lea.vmem %s22_s16, 224  ;;  %s2699_s1 = scalar_lea.vmem %s22_s16, 1792 }
  0x1d   :  { %p2696_p11 = scmp.ne.s32.totalorder %s22_s16, %s2695_s24  ;;  %p2700_p12 = scmp.lt.s32.totalorder %s22_s16, %s22_s16 }
  0x1e   :  { %p2701_p13 = scmp.lt.s32.totalorder %s2699_s1, %s2695_s24 }
  0x20   :  { %p2702_p0 = por %p2701_p13, %p2700_p12 }
  0x22   :  { %p2703_p1 = pnand %p2702_p0, %p2696_p11 }
  0x24   :  { %2706 = shalt.err (!%p2703_p1)
}
  0x25   :  { %s2785_s25 = smov 224   ;;  %s2786_s26 = smov 14  }
  0x26   :  { %27 = dma.hbm_to_vmem [thread:$0]  %s3000_s0, 224, %s22_s16, [#allocation3], %s2785_s25, %s2785_s25, %s2786_s26  }
  0x27   :  { %s2787_s29 = smov [#allocation7]   ;;  %s2707_s10 = scalar_lea.hbm %s3003_s3, 3072 }
  0x28   :  { %s47_s30 = sshll.u32 %s2787_s29, 4  ;;  %p2708_p2 = scmp.ne.s32.totalorder %s3003_s3, %s2707_s10  ;;  %s48_s30 = int_to_ptr.vmem [resolvable:$true] %s47_s30 }
  0x29   :  { %p2711_p3 = scmp.lt.u32.totalorder %s2707_s10, %s3003_s3 }
  0x2b   :  { %p2713_p4 = pnand %p2711_p3, %p2708_p2 }
  0x2d   :  { %2716 = shalt.err (!%p2713_p4)
}
  0x2e   :  { %s2717_s15 = scalar_lea.vmem %s48_s30, 3072  ;;  %p2722_p6 = scmp.lt.s32.totalorder %s48_s30, %s48_s30 }
  0x2f   :  { %p2718_p5 = scmp.ne.s32.totalorder %s48_s30, %s2717_s15  ;;  %p2723_p7 = scmp.lt.s32.totalorder %s2717_s15, %s2717_s15 }
  0x31   :  { %p2724_p8 = por %p2723_p7, %p2722_p6 }
  0x33   :  { %p2725_p9 = pnand %p2724_p8, %p2718_p5 }
  0x35   :  { %2728 = shalt.err (!%p2725_p9)
}
  0x36   :  { %s2788_s0 = smov 64   ;;  %s2789_s16 = smov 4  }
  0x37   :  { %53 = dma.hbm_to_vmem [thread:$0]  %s3003_s3, 3072, %s48_s30, [#allocation6], %s2788_s0, %s2788_s0, %s2789_s16  }
  0x38   :  { %s2790_s19 = smov [#allocation8]   ;;  %s2729_s23 = scalar_lea.hbm %s3005_s5, 1024 }
  0x39   :  { %s61_s20 = sshll.u32 %s2790_s19, 4  ;;  %p2730_p10 = scmp.ne.s32.totalorder %s3005_s5, %s2729_s23  ;;  %s62_s20 = int_to_ptr.vmem [resolvable:$true] %s61_s20 }
  0x3a   :  { %p2733_p11 = scmp.lt.u32.totalorder %s2729_s23, %s3005_s5 }
  0x3c   :  { %p2735_p12 = pnand %p2733_p11, %p2730_p10 }
  0x3e   :  { %2738 = shalt.err (!%p2735_p12)
}
  0x3f   :  { %s2739_s27 = scalar_lea.vmem %s62_s20, 1024  ;;  %p2744_p0 = scmp.lt.s32.totalorder %s62_s20, %s62_s20 }
  0x40   :  { %p2740_p13 = scmp.ne.s32.totalorder %s62_s20, %s2739_s27  ;;  %p2745_p1 = scmp.lt.s32.totalorder %s2739_s27, %s2739_s27 }
  0x42   :  { %p2746_p2 = por %p2745_p1, %p2744_p0 }
  0x44   :  { %p2747_p3 = pnand %p2746_p2, %p2740_p13 }
  0x46   :  { %2750 = shalt.err (!%p2747_p3)
}
  0x47   :  { %67 = dma.hbm_to_vmem [thread:$0]  %s3005_s5, 1024, %s62_s20, [#allocation9], %s2788_s0, %s2788_s0, %s2789_s16  }
  0x48   :  { %2773 = dma.done.wait [#allocation3], 1792  }
  0x49   :  { %2774 = vsyncadd [#allocation3], 4294965504 }
  0x4a   :  { %2775 = dma.done.wait [#allocation6], 21888  }
  0x4b   :  { %2776 = vsyncadd [#allocation6], 4294945408 }
  0x4c   :  { %2777 = dma.done.wait [#allocation9], 1024  }
  0x4d   :  { %2778 = vsyncadd [#allocation9], 4294966272  ;;  %v2411_v0 = vld [vmem:[#allocation5 + $0x4] ss:$12 sps:$4 sm:$0xff]   ;;  %v2413_v1 = vld [vmem:[#allocation5] ss:$12 sps:$4 sm:$0xff]   ;;  %v122_v11 = vlaneseq }
  0x4e   :  { %1279 = vmatprep.subr.bf16.mxu0 %v2411_v0  ;;  %v2414_v2 = vld [vmem:[#allocation5 + $0x1c] ss:$12 sps:$4 sm:$0xff]   ;;  %v2416_v3 = vld [vmem:[#allocation5 + $0x18] ss:$12 sps:$4 sm:$0xff]   ;;  %v2417_v4 = vld [vmem:[#allocation5 + $0x34] ss:$12 sps:$4 sm:$0xff]  }
  0x4f   :  { %1280 = vmatpush1.bf16.msra.mxu0 %v2413_v1  ;;  %v2419_v5 = vld [vmem:[#allocation5 + $0x30] ss:$12 sps:$4 sm:$0xff]   ;;  %v2420_v6 = vld [vmem:[#allocation5 + $0x4c] ss:$12 sps:$4 sm:$0xff]   ;;  %v2422_v7 = vld [vmem:[#allocation5 + $0x48] ss:$12 sps:$4 sm:$0xff]  }
  0x50   :  { %1281 = vmatprep.subr.bf16.mxu0 %v2414_v2  ;;  %v2423_v8 = vld [vmem:[#allocation5 + $0x64] ss:$12 sps:$4 sm:$0xff]   ;;  %v2791_v9 = vmov 1983009808   ;;  %v2425_v12 = vld [vmem:[#allocation5 + $0x60] ss:$12 sps:$4 sm:$0xff]  }
  0x51   :  { %v120_v10 = vunpack.c.l.s4 %v2791_v9  ;;  %v2426_v13 = vld [vmem:[#allocation5 + $0x7c] ss:$12 sps:$4 sm:$0xff]   ;;  %v2886_v15 = vshrl.u32 %v122_v11, 7  ;;  %v2428_v16 = vld [vmem:[#allocation5 + $0x78] ss:$12 sps:$4 sm:$0xff]   ;;  %vm1275_vm0 = vcmask 130048  }
  0x52   :  { %v2429_v17 = vld [vmem:[#allocation5 + $0x94] ss:$12 sps:$4 sm:$0xff]   ;;  %v2431_v18 = vld [vmem:[#allocation5 + $0x90] ss:$12 sps:$4 sm:$0xff]   ;;  %v2432_v20 = vld [vmem:[#allocation5 + $0xac] ss:$12 sps:$4 sm:$0xff]  }
  0x53   :  { %1282 = vmatpush1.bf16.msra.mxu0 %v2416_v3  ;;  %v121_v14 = vunpack.c.0.s8 %v120_v10  ;;  %v2459_v21 = vld [vmem:[#allocation2] ss:$14 sps:$4 sm:$0xff]   ;;  %v2462_v22 = vld [vmem:[#allocation2 + $0x1c] ss:$14 sps:$4 sm:$0xff]   ;;  %v2465_v23 = vld [vmem:[#allocation2 + $0x38] ss:$14 sps:$4 sm:$0xff]  }
  0x54   :  { %1283 = vmatprep.subr.bf16.mxu0 %v2417_v4  ;;  %v2468_v26 = vld [vmem:[#allocation2 + $0x54] ss:$14 sps:$4 sm:$0xff]   ;;  %v2437_v32 = vld [vmem:[#allocation5 + $0xc0] ss:$12 sps:$4 sm:$0xff]   ;;  %v2438_v36 = vld [vmem:[#allocation5 + $0xdc] ss:$12 sps:$4 sm:$0xff]  }
  0x55   :  { %v2889_v19 = vsub.s32 %v121_v14, %v2886_v15  ;;  %v2434_v27 = vld [vmem:[#allocation5 + $0xa8] ss:$12 sps:$4 sm:$0xff]   ;;  %v2435_v29 = vld [vmem:[#allocation5 + $0xc4] ss:$12 sps:$4 sm:$0xff]   ;;  %v2482_v38 = vld [vmem:[#allocation5 + $0xe0] ss:$12 sps:$4 sm:$0xff]  }
  0x56   :  { %v2477_v34 = vld [vmem:[#allocation5 + $0xc8] ss:$12 sps:$4 sm:$0xff]   ;;  %v2483_v39 = vld [vmem:[#allocation5 + $0x20] ss:$12 sps:$4 sm:$0xff]   ;;  %v2440_v40 = vld [vmem:[#allocation5 + $0xd8] ss:$12 sps:$4 sm:$0xff]  }
  0x57   :  { %1284 = vmatpush1.bf16.msra.mxu0 %v2419_v5  ;;  %v2892_v24 = vrot.slane %v2459_v21, %v2889_v19  ;;  %v2895_v25 = vrot.slane %v2462_v22, %v2889_v19  ;;  %v2898_v28 = vrot.slane %v2465_v23, %v2889_v19  ;;  %v2903_v31 = vrot.slane %v2468_v26, %v2889_v19  ;;  %v2478_v35 = vld [vmem:[#allocation5 + $0x8] ss:$12 sps:$4 sm:$0xff]   ;;  %v2487_v42 = vld [vmem:[#allocation5 + $0xf8] ss:$12 sps:$4 sm:$0xff]   ;;  %v2443_v44 = vld [vmem:[#allocation5 + $0xf0] ss:$12 sps:$4 sm:$0xff]  }
  0x58   :  { %1285 = vmatprep.subr.bf16.mxu0 %v2420_v6  ;;  %2224 = vmatprep.subr.bf16.mxu1 %v2477_v34  ;;  %v2441_v41 = vld [vmem:[#allocation5 + $0xf4] ss:$12 sps:$4 sm:$0xff]   ;;  %v2488_v43 = vld [vmem:[#allocation5 + $0x38] ss:$12 sps:$4 sm:$0xff]   ;;  %v2492_v46 = vld [vmem:[#allocation5 + $0x110] ss:$12 sps:$4 sm:$0xff]  }
  0x59   :  { %v148_v30 = vcombine.high %v2892_v24, %v2895_v25  ;;  %v219_v33 = vcombine.high %v2898_v28, %v2903_v31  ;;  %2225 = vmatpush3.bf16.msra.mxu1 %v2478_v35  ;;  %v2444_v45 = vld [vmem:[#allocation5 + $0x10c] ss:$12 sps:$4 sm:$0xff]   ;;  %v2493_v47 = vld [vmem:[#allocation5 + $0x50] ss:$12 sps:$4 sm:$0xff]   ;;  %v2446_v48 = vld [vmem:[#allocation5 + $0x108] ss:$12 sps:$4 sm:$0xff]   ;;  %v218_v9 = vcombine.low %v2898_v28, %v2903_v31 }
  0x5a   :  { %2226 = vmatprep.subr.bf16.mxu1 %v2482_v38  ;;  %v2497_v49 = vld [vmem:[#allocation5 + $0x128] ss:$12 sps:$4 sm:$0xff]   ;;  %v2447_v50 = vld [vmem:[#allocation5 + $0x124] ss:$12 sps:$4 sm:$0xff]   ;;  %v2502_v52 = vld [vmem:[#allocation5 + $0x140] ss:$12 sps:$4 sm:$0xff]  }
  0x5b   :  { %1286 = vmatpush1.bf16.msra.mxu0 %v2422_v7  ;;  %v272_v37 = vpack.c.bf16 %v219_v33, %v148_v30  ;;  %v2498_v51 = vld [vmem:[#allocation5 + $0x68] ss:$12 sps:$4 sm:$0xff]   ;;  %v2449_v53 = vld [vmem:[#allocation5 + $0x120] ss:$12 sps:$4 sm:$0xff]   ;;  %v2452_v55 = vld [vmem:[#allocation5 + $0x138] ss:$12 sps:$4 sm:$0xff]  }
  0x5c   :  { %1287 = vmatprep.subr.bf16.mxu0 %v2423_v8  ;;  %v2450_v54 = vld [vmem:[#allocation5 + $0x13c] ss:$12 sps:$4 sm:$0xff]   ;;  %v2461_v56 = vld [vmem:[#allocation2 + $0x4] ss:$14 sps:$4 sm:$0xff]   ;;  %v2456_v6 = vld [vmem:[#allocation5 + $0x16c] ss:$12 sps:$4 sm:$0xff]   ;;  %v147_v8 = vcombine.low %v2892_v24, %v2895_v25 }
  0x5d   :  { %1311 = vmatprep.mubr.bf16.mxu0 %v272_v37  ;;  %1483 = vmatprep.mubr.bf16.mxu1 %v272_v37  ;;  %v2464_v57 = vld [vmem:[#allocation2 + $0x20] ss:$14 sps:$4 sm:$0xff]   ;;  %v2467_v58 = vld [vmem:[#allocation2 + $0x3c] ss:$14 sps:$4 sm:$0xff]   ;;  %v2470_v61 = vld [vmem:[#allocation2 + $0x58] ss:$14 sps:$4 sm:$0xff]   ;;  %v2908_v2 = vrot.slane %v2461_v56, %v2889_v19 }
  0x5e   :  { %2227 = vmatpush3.bf16.msra.mxu1 %v2483_v39  ;;  %v2503_v59 = vld [vmem:[#allocation5 + $0x80] ss:$12 sps:$4 sm:$0xff]   ;;  %v2507_v60 = vld [vmem:[#allocation5 + $0x158] ss:$12 sps:$4 sm:$0xff]   ;;  %v2512_v0 = vld [vmem:[#allocation5 + $0x170] ss:$12 sps:$4 sm:$0xff]   ;;  %v2911_v3 = vrot.slane %v2464_v57, %v2889_v19  ;;  %v2914_v4 = vrot.slane %v2467_v58, %v2889_v19  ;;  %v2917_v5 = vrot.slane %v2470_v61, %v2889_v19 }
  0x5f   :  { %1288 = vmatpush1.bf16.msra.mxu0 %v2425_v12  ;;  %2228 = vmatprep.subr.bf16.mxu1 %v2487_v42  ;;  %v2453_v62 = vld [vmem:[#allocation5 + $0x154] ss:$12 sps:$4 sm:$0xff]   ;;  %v2508_v63 = vld [vmem:[#allocation5 + $0x98] ss:$12 sps:$4 sm:$0xff]   ;;  %v2455_v1 = vld [vmem:[#allocation5 + $0x150] ss:$12 sps:$4 sm:$0xff]  }
  0x60   :  { %1289 = vmatprep.subr.bf16.mxu0 %v2426_v13  ;;  %v2513_v7 = vld [vmem:[#allocation5 + $0xb0] ss:$12 sps:$4 sm:$0xff]   ;;  %v2517_v10 = vld [vmem:[#allocation5 + $0x248] ss:$12 sps:$4 sm:$0xff]   ;;  %v150_v12 = vcombine.high %v2908_v2, %v2911_v3  ;;  %v221_v13 = vcombine.high %v2914_v4, %v2917_v5  ;;  %v2523_v23 = vld [vmem:[#allocation5 + $0x1a0] ss:$12 sps:$4 sm:$0xff]  }
  0x61   :  { %v2458_v11 = vld [vmem:[#allocation5 + $0x168] ss:$12 sps:$4 sm:$0xff]   ;;  %v2473_v14 = vld [vmem:[#allocation5 + $0x184] ss:$12 sps:$4 sm:$0xff]   ;;  %v2486_v30 = vld [vmem:[#allocation5 + $0x1cc] ss:$12 sps:$4 sm:$0xff]  }
  0x62   :  { %2229 = vmatpush3.bf16.msra.mxu1 %v2488_v43  ;;  %v274_v21 = vpack.c.bf16 %v221_v13, %v150_v12  ;;  %v2476_v22 = vld [vmem:[#allocation5 + $0x19c] ss:$12 sps:$4 sm:$0xff]   ;;  %v2527_v24 = vld [vmem:[#allocation5 + $0x278] ss:$12 sps:$4 sm:$0xff]   ;;  %v2481_v26 = vld [vmem:[#allocation5 + $0x1b4] ss:$12 sps:$4 sm:$0xff]  }
  0x63   :  { %1290 = vmatpush1.bf16.msra.mxu0 %v2428_v16  ;;  %2230 = vmatprep.subr.bf16.mxu1 %v2492_v46  ;;  %v2518_v16 = vld [vmem:[#allocation5 + $0x188] ss:$12 sps:$4 sm:$0xff]   ;;  %v2474_v25 = vld [vmem:[#allocation5 + $0x198] ss:$12 sps:$4 sm:$0xff]   ;;  %v2532_v28 = vld [vmem:[#allocation5 + $0x290] ss:$12 sps:$4 sm:$0xff]  }
  0x64   :  { %1291 = vmatprep.subr.bf16.mxu0 %v2429_v17  ;;  %v271_v17 = vpack.c.bf16 %v218_v9, %v147_v8  ;;  %v2533_v31 = vld [vmem:[#allocation5 + $0x1d0] ss:$12 sps:$4 sm:$0xff]   ;;  %v2484_v33 = vld [vmem:[#allocation5 + $0x1c8] ss:$12 sps:$4 sm:$0xff]   ;;  %v2489_v37 = vld [vmem:[#allocation5 + $0x1e0] ss:$12 sps:$4 sm:$0xff]  }
  0x65   :  { %v2491_v34 = vld [vmem:[#allocation5 + $0x1e4] ss:$12 sps:$4 sm:$0xff]   ;;  %v2538_v35 = vld [vmem:[#allocation5 + $0x1e8] ss:$12 sps:$4 sm:$0xff]   ;;  %v2543_v39 = vld [vmem:[#allocation5 + $0x200] ss:$12 sps:$4 sm:$0xff]  }
  0x66   :  { %2231 = vmatpush3.bf16.msra.mxu1 %v2493_v47  ;;  %v2496_v38 = vld [vmem:[#allocation5 + $0x1fc] ss:$12 sps:$4 sm:$0xff]   ;;  %v2501_v42 = vld [vmem:[#allocation5 + $0x214] ss:$12 sps:$4 sm:$0xff]   ;;  %v2548_v43 = vld [vmem:[#allocation5 + $0x218] ss:$12 sps:$4 sm:$0xff]  }
  0x67   :  { %1292 = vmatpush1.bf16.msra.mxu0 %v2431_v18  ;;  %2232 = vmatprep.subr.bf16.mxu1 %v2497_v49  ;;  %v2522_v18 = vld [vmem:[#allocation5 + $0x260] ss:$12 sps:$4 sm:$0xff]   ;;  %v2553_v47 = vld [vmem:[#allocation5 + $0x230] ss:$12 sps:$4 sm:$0xff]   ;;  %v220_v49 = vcombine.low %v2914_v4, %v2917_v5  ;;  %v2577_v5 = vld [vmem:[#allocation5 + $0x428] ss:$12 sps:$4 sm:$0xff]  }
  0x68   :  { %1293 = vmatprep.subr.bf16.mxu0 %v2432_v20  ;;  %v2471_v20 = vld [vmem:[#allocation5 + $0x180] ss:$12 sps:$4 sm:$0xff]   ;;  %v2516_v57 = vld [vmem:[#allocation5 + $0x25c] ss:$12 sps:$4 sm:$0xff]   ;;  %v2531_v4 = vld [vmem:[#allocation5 + $0x2a4] ss:$12 sps:$4 sm:$0xff]  }
  0x69   :  { %v2506_v46 = vld [vmem:[#allocation5 + $0x22c] ss:$12 sps:$4 sm:$0xff]   ;;  %v2521_v61 = vld [vmem:[#allocation5 + $0x274] ss:$12 sps:$4 sm:$0xff]   ;;  %vm2793_vm1 = vmmov 0  }
  0x6a   :  { %2233 = vmatpush3.bf16.msra.mxu1 %v2498_v51  ;;  %v2504_v51 = vld [vmem:[#allocation5 + $0x228] ss:$12 sps:$4 sm:$0xff]   ;;  %v2509_v56 = vld [vmem:[#allocation5 + $0x240] ss:$12 sps:$4 sm:$0xff]  }
  0x6b   :  { %1294 = vmatpush1.bf16.msra.mxu0 %v2434_v27  ;;  %2234 = vmatprep.subr.bf16.mxu1 %v2502_v52  ;;  %v2528_v27 = vld [vmem:[#allocation5 + $0x1b8] ss:$12 sps:$4 sm:$0xff]   ;;  %v2563_v58 = vld [vmem:[#allocation5 + $0x320] ss:$12 sps:$4 sm:$0xff]  }
  0x6c   :  { %1295 = vmatprep.subr.bf16.mxu0 %v2435_v29  ;;  %v2479_v29 = vld [vmem:[#allocation5 + $0x1b0] ss:$12 sps:$4 sm:$0xff]   ;;  %v2594_v8 = vld [vmem:[#allocation2 + $0x8] ss:$14 sps:$4 sm:$0xff]   ;;  %v2529_v9 = vld [vmem:[#allocation5 + $0x2a0] ss:$12 sps:$4 sm:$0xff]  }
  0x6d   :  { %v2511_v52 = vld [vmem:[#allocation5 + $0x244] ss:$12 sps:$4 sm:$0xff]   ;;  %v161_v12 = vrot.slane %v2594_v8, %v2889_v19 }
  0x6e   :  { %2235 = vmatpush3.bf16.msra.mxu1 %v2503_v59  ;;  %v2567_v59 = vld [vmem:[#allocation5 + $0x3f8] ss:$12 sps:$4 sm:$0xff]   ;;  %v2600_v13 = vld [vmem:[#allocation2 + $0x40] ss:$14 sps:$4 sm:$0xff]  }
  0x6f   :  { %1296 = vmatpush1.bf16.msra.mxu0 %v2437_v32  ;;  %2236 = vmatprep.subr.bf16.mxu1 %v2507_v60  ;;  %v2537_v32 = vld [vmem:[#allocation5 + $0x2a8] ss:$12 sps:$4 sm:$0xff]   ;;  %v2514_v60 = vld [vmem:[#allocation5 + $0x258] ss:$12 sps:$4 sm:$0xff]  }
  0x70   :  { %1297 = vmatprep.subr.bf16.mxu0 %v2438_v36  ;;  %v2542_v36 = vld [vmem:[#allocation5 + $0x2c0] ss:$12 sps:$4 sm:$0xff]   ;;  %v2618_v8 = vld [vmem:[#allocation5 + $0x424] ss:$12 sps:$4 sm:$0xff]  }
  0x72   :  { %2237 = vmatpush3.bf16.msra.mxu1 %v2508_v63  ;;  %v2572_v63 = vld [vmem:[#allocation5 + $0x410] ss:$12 sps:$4 sm:$0xff]  }
  0x73   :  { %1298 = vmatpush1.bf16.msra.mxu0 %v2440_v40  ;;  %2238 = vmatprep.subr.bf16.mxu1 %v2512_v0  ;;  %v2547_v40 = vld [vmem:[#allocation5 + $0x2d8] ss:$12 sps:$4 sm:$0xff]   ;;  %v2519_v0 = vld [vmem:[#allocation5 + $0x270] ss:$12 sps:$4 sm:$0xff]  }
  0x74   :  { %1299 = vmatprep.subr.bf16.mxu0 %v2441_v41  ;;  %v2494_v41 = vld [vmem:[#allocation5 + $0x1f8] ss:$12 sps:$4 sm:$0xff]  }
  0x76   :  { %2239 = vmatpush3.bf16.msra.mxu1 %v2513_v7  ;;  %v2582_v7 = vld [vmem:[#allocation5 + $0x440] ss:$12 sps:$4 sm:$0xff]  }
  0x77   :  { %1300 = vmatpush1.bf16.msra.mxu0 %v2443_v44  ;;  %2246 = vmatprep.subr.bf16.mxu1 %v2517_v10  ;;  %v2552_v44 = vld [vmem:[#allocation5 + $0x2f0] ss:$12 sps:$4 sm:$0xff]   ;;  %v2597_v10 = vld [vmem:[#allocation2 + $0x24] ss:$14 sps:$4 sm:$0xff]  }
  0x78   :  { %1301 = vmatprep.subr.bf16.mxu0 %v2444_v45  ;;  %v2499_v45 = vld [vmem:[#allocation5 + $0x210] ss:$12 sps:$4 sm:$0xff]  }
  0x79   :  { %1484 = vmatmul.mubr.bf16.vlgmr.msra.gmra.mrb[0].mxu1 %v271_v17 }
  0x7a   :  { %2247 = vmatpush3.bf16.msra.mxu1 %v2518_v16  ;;  %1524 = vmatprep.mubr.bf16.mxu1 %v274_v21  ;;  %v175_v16 = vrot.slane %v2597_v10, %v2889_v19  ;;  %v2621_v10 = vld [vmem:[#allocation5 + $0x43c] ss:$12 sps:$4 sm:$0xff]  }
  0x7b   :  { %1302 = vmatpush1.bf16.msra.mxu0 %v2446_v48  ;;  %2248 = vmatprep.subr.bf16.mxu1 %v2522_v18  ;;  %v149_v48 = vcombine.low %v2908_v2, %v2911_v3  ;;  %v2524_v2 = vld [vmem:[#allocation5 + $0x288] ss:$12 sps:$4 sm:$0xff]   ;;  %v2573_v3 = vld [vmem:[#allocation5 + $0x350] ss:$12 sps:$4 sm:$0xff]   ;;  %v2587_v18 = vld [vmem:[#allocation5 + $0x458] ss:$12 sps:$4 sm:$0xff]  }
  0x7c   :  { %1303 = vmatprep.subr.bf16.mxu0 %v2447_v50  ;;  %v2557_v50 = vld [vmem:[#allocation5 + $0x3c8] ss:$12 sps:$4 sm:$0xff]  }
  0x7e   :  { %2249 = vmatpush3.bf16.msra.mxu1 %v2523_v23  ;;  %v2588_v23 = vld [vmem:[#allocation5 + $0x398] ss:$12 sps:$4 sm:$0xff]  }
  0x7f   :  { %1304 = vmatpush1.bf16.msra.mxu0 %v2449_v53  ;;  %2250 = vmatprep.subr.bf16.mxu1 %v2527_v24  ;;  %v2558_v53 = vld [vmem:[#allocation5 + $0x308] ss:$12 sps:$4 sm:$0xff]   ;;  %v184_v24 = vcombine.high %v161_v12, %v175_v16 }
  0x80   :  { %1305 = vmatprep.subr.bf16.mxu0 %v2450_v54  ;;  %v2931_v54 = vpack.c.bf16 %v220_v49, %v149_v48  ;;  %v2792_v48 = vmov 0.0  }
  0x82   :  { %2251 = vmatpush3.bf16.msra.mxu1 %v2528_v27  ;;  %v2596_v27 = vld [vmem:[#allocation2 + $0xc] ss:$14 sps:$4 sm:$0x33]  }
  0x83   :  { %1306 = vmatpush1.bf16.msra.mxu0 %v2452_v55  ;;  %2252 = vmatprep.subr.bf16.mxu1 %v2532_v28  ;;  %v2562_v55 = vld [vmem:[#allocation5 + $0x3e0] ss:$12 sps:$4 sm:$0xff]  }
  0x84   :  { %1307 = vmatprep.subr.bf16.mxu0 %v2453_v62  ;;  %v2568_v62 = vld [vmem:[#allocation5 + $0x338] ss:$12 sps:$4 sm:$0xff]  }
  0x86   :  { %2253 = vmatpush3.bf16.msra.mxu1 %v2533_v31  ;;  %v2602_v31 = vld [vmem:[#allocation2 + $0x44] ss:$14 sps:$4 sm:$0x33]  }
  0x87   :  { %1308 = vmatpush1.bf16.msra.mxu0 %v2455_v1  ;;  %2254 = vmatprep.subr.bf16.mxu1 %v2537_v32  ;;  %v2526_v1 = vld [vmem:[#allocation5 + $0x28c] ss:$12 sps:$4 sm:$0xff]  }
  0x88   :  { %1309 = vmatprep.subr.bf16.mxu0 %v2456_v6  ;;  %v2578_v6 = vld [vmem:[#allocation5 + $0x368] ss:$12 sps:$4 sm:$0xff]  }
  0x8a   :  { %2255 = vmatpush3.bf16.msra.mxu1 %v2538_v35  ;;  %v183_v35 = vcombine.low %v161_v12, %v175_v16  ;;  %v2624_v12 = vld [vmem:[#allocation5 + $0x454] ss:$12 sps:$4 sm:$0xff]  }
  0x8b   :  { %1310 = vmatpush1.bf16.msra.mxu0 %v2458_v11  ;;  %2256 = vmatprep.subr.bf16.mxu1 %v2542_v36  ;;  %v2536_v11 = vld [vmem:[#allocation5 + $0x2bc] ss:$12 sps:$4 sm:$0xff]  }
  0x8c   :  { %1322 = vmatprep.subr.bf16.mxu0 %v2473_v14  ;;  %v2583_v14 = vld [vmem:[#allocation5 + $0x380] ss:$12 sps:$4 sm:$0xff]   ;;  %v2625_v16 = vld [vmem:[#allocation5 + $0x468] ss:$12 sps:$4 sm:$0xff]  }
  0x8e   :  { %1312 = vmatmul.mubr.bf16.vlgmr.msra.gmra.mrb[0].mxu0 %v271_v17  ;;  %2257 = vmatpush3.bf16.msra.mxu1 %v2543_v39  ;;  %v2603_v17 = vld [vmem:[#allocation2 + $0x5c] ss:$14 sps:$4 sm:$0xff]   ;;  %v168_v39 = vrot.slane %v2596_v27, %v2889_v19  ;;  %v2637_v27 = vld [vmem:[#allocation7 + $0x58] sm:$0xff]  }
  0x8f   :  { %1323 = vmatpush1.bf16.msra.mxu0 %v2471_v20  ;;  %1354 = vmatprep.mubr.bf16.mxu0 %v274_v21  ;;  %v232_v20 = vrot.slane %v2600_v13, %v2889_v19  ;;  %v2534_v21 = vld [vmem:[#allocation5 + $0x2b8] ss:$12 sps:$4 sm:$0xff]   ;;  %v2622_v13 = vld [vmem:[#allocation5 + $0x450] ss:$12 sps:$4 sm:$0xff]  }
  0x90   :  { %1324 = vmatprep.subr.bf16.mxu0 %v2476_v22  ;;  %2258 = vmatprep.subr.bf16.mxu1 %v2547_v40  ;;  %v2541_v22 = vld [vmem:[#allocation5 + $0x2d4] ss:$12 sps:$4 sm:$0xff]   ;;  %v2551_v40 = vld [vmem:[#allocation5 + $0x304] ss:$12 sps:$4 sm:$0xff]  }
  0x92   :  { %2259 = vmatpush3.bf16.msra.mxu1 %v2548_v43 }
  0x93   :  { %1325 = vmatpush1.bf16.msra.mxu0 %v2474_v25  ;;  %2260 = vmatprep.subr.bf16.mxu1 %v2552_v44  ;;  %v246_v25 = vrot.slane %v2603_v17, %v2889_v19  ;;  %v2630_v17 = vld [vmem:[#allocation5 + $0x484] ss:$12 sps:$4 sm:$0xff]  }
  0x94   :  { %1326 = vmatprep.subr.bf16.mxu0 %v2481_v26  ;;  %v2592_v26 = vld [vmem:[#allocation5 + $0x470] ss:$12 sps:$4 sm:$0xff]  }
  0x95   :  { %v255_v28 = vcombine.high %v232_v20, %v246_v25  ;;  %v254_v36 = vcombine.low %v232_v20, %v246_v25  ;;  %v2794_v20 = vmov 0   ;;  %v2635_v25 = vld [vmem:[#allocation7 + $0x50] sm:$0xff]  }
  0x96   :  { %2261 = vmatpush3.bf16.msra.mxu1 %v2553_v47  ;;  %v2556_v47 = vld [vmem:[#allocation5 + $0x31c] ss:$12 sps:$4 sm:$0xff]  }
  0x97   :  { %1327 = vmatpush1.bf16.msra.mxu0 %v2479_v29  ;;  %2268 = vmatprep.subr.bf16.mxu1 %v2557_v50  ;;  %v2599_v29 = vld [vmem:[#allocation2 + $0x28] ss:$14 sps:$4 sm:$0x33]   ;;  %v276_v32 = vpack.c.bf16 %v255_v28, %v184_v24  ;;  %v2942_v44 = vpack.c.bf16 %v254_v36, %v183_v35  ;;  %v2638_v28 = vld [vmem:[#allocation7 + $0x18] sm:$0xff]  }
  0x98   :  { %1328 = vmatprep.subr.bf16.mxu0 %v2486_v30  ;;  %v2539_v30 = vld [vmem:[#allocation5 + $0x2d0] ss:$12 sps:$4 sm:$0xff]   ;;  %v2634_v24 = vld [vmem:[#allocation7 + $0x8] sm:$0xff]  }
  0x99   :  { %1525 = vmatmul.mubr.bf16.vlgmr.msra.gmra.mrb[4].mxu1 %v2931_v54 }
  0x9a   :  { %2269 = vmatpush3.bf16.msra.mxu1 %v2558_v53  ;;  %1565 = vmatprep.mubr.bf16.mxu1 %v276_v32  ;;  %v2559_v53 = vld [vmem:[#allocation5 + $0x330] ss:$12 sps:$4 sm:$0xff]  }
  0x9b   :  { %1329 = vmatpush1.bf16.msra.mxu0 %v2484_v33  ;;  %2270 = vmatprep.subr.bf16.mxu1 %v2562_v55  ;;  %v2546_v33 = vld [vmem:[#allocation5 + $0x2ec] ss:$12 sps:$4 sm:$0xff]  }
  0x9c   :  { %1330 = vmatprep.subr.bf16.mxu0 %v2491_v34  ;;  %v2605_v34 = vld [vmem:[#allocation2 + $0x60] ss:$14 sps:$4 sm:$0x33]   ;;  %v2566_v55 = vld [vmem:[#allocation5 + $0x34c] ss:$12 sps:$4 sm:$0xff]  }
  0x9d   :  { %v253_v43 = vrot.slane %v2605_v34, %v2889_v19 }
  0x9e   :  { %2271 = vmatpush3.bf16.msra.mxu1 %v2563_v58  ;;  %v2569_v58 = vld [vmem:[#allocation5 + $0x360] ss:$12 sps:$4 sm:$0xff]  }
  0x9f   :  { %1331 = vmatpush1.bf16.msra.mxu0 %v2489_v37  ;;  %2272 = vmatprep.subr.bf16.mxu1 %v2567_v59  ;;  %v2593_v37 = vld [vmem:[#allocation5 + $0x3b0] ss:$12 sps:$4 sm:$0xff]  }
  0xa0   :  { %1332 = vmatprep.subr.bf16.mxu0 %v2496_v38  ;;  %v2544_v38 = vld [vmem:[#allocation5 + $0x2e8] ss:$12 sps:$4 sm:$0xff]  }
  0xa1   :  { %v2576_v59 = vld [vmem:[#allocation5 + $0x37c] ss:$12 sps:$4 sm:$0xff]  }
  0xa2   :  { %2273 = vmatpush3.bf16.msra.mxu1 %v2568_v62  ;;  %v2586_v62 = vld [vmem:[#allocation5 + $0x3ac] ss:$12 sps:$4 sm:$0xff]  }
  0xa3   :  { %1333 = vmatpush1.bf16.msra.mxu0 %v2494_v41  ;;  %2274 = vmatprep.subr.bf16.mxu1 %v2572_v63  ;;  %v182_v41 = vrot.slane %v2599_v29, %v2889_v19  ;;  %v2584_v63 = vld [vmem:[#allocation5 + $0x3a8] ss:$12 sps:$4 sm:$0xff]   ;;  %v2639_v29 = vld [vmem:[#allocation7 + $0x60] sm:$0xff]  }
  0xa4   :  { %1334 = vmatprep.subr.bf16.mxu0 %v2501_v42  ;;  %v239_v42 = vrot.slane %v2602_v31, %v2889_v19  ;;  %v2561_v19 = vld [vmem:[#allocation5 + $0x334] ss:$12 sps:$4 sm:$0xff]  }
  0xa5   :  { %v185_v49 = vcombine.low %v168_v39, %v182_v41  ;;  %v2641_v31 = vld [vmem:[#allocation7 + $0x68] sm:$0xff]   ;;  %v2643_v39 = vld [vmem:[#allocation7 + $0x70] sm:$0xff]   ;;  %v2645_v41 = vld [vmem:[#allocation7 + $0x78] sm:$0xff]  }
  0xa6   :  { %2275 = vmatpush3.bf16.msra.mxu1 %v2573_v3  ;;  %v256_v50 = vcombine.low %v239_v42, %v253_v43  ;;  %v2606_v3 = vld [vmem:[#allocation5 + $0x3d8] ss:$12 sps:$4 sm:$0xff]   ;;  %v2646_v42 = vld [vmem:[#allocation7 + $0x38] sm:$0xff]   ;;  %v486_v43 = vsub.s32 2, %v2886_v15 }
  0xa7   :  { %1335 = vmatpush1.bf16.msra.mxu0 %v2499_v45  ;;  %2276 = vmatprep.subr.bf16.mxu1 %v2577_v5  ;;  %v2612_v45 = vld [vmem:[#allocation5 + $0x488] ss:$12 sps:$4 sm:$0xff]   ;;  %v2609_v5 = vld [vmem:[#allocation5 + $0x3f0] ss:$12 sps:$4 sm:$0xff]  }
  0xa8   :  { %1336 = vmatprep.subr.bf16.mxu0 %v2506_v46  ;;  %v2549_v46 = vld [vmem:[#allocation5 + $0x300] ss:$12 sps:$4 sm:$0xff]  }
  0xaa   :  { %2277 = vmatpush3.bf16.msra.mxu1 %v2578_v6  ;;  %v2615_v6 = vld [vmem:[#allocation5 + $0x40c] ss:$12 sps:$4 sm:$0xff]  }
  0xab   :  { %1337 = vmatpush1.bf16.msra.mxu0 %v2504_v51  ;;  %2278 = vmatprep.subr.bf16.mxu1 %v2582_v7  ;;  %v2554_v51 = vld [vmem:[#allocation5 + $0x318] ss:$12 sps:$4 sm:$0xff]   ;;  %v2613_v7 = vld [vmem:[#allocation5 + $0x408] ss:$12 sps:$4 sm:$0xff]  }
  0xac   :  { %1338 = vmatprep.subr.bf16.mxu0 %v2511_v52  ;;  %v2949_v52 = vpack.c.bf16 %v256_v50, %v185_v49 }
  0xae   :  { %2279 = vmatpush3.bf16.msra.mxu1 %v2583_v14  ;;  %v2627_v14 = vld [vmem:[#allocation5 + $0x46c] ss:$12 sps:$4 sm:$0xff]  }
  0xaf   :  { %1339 = vmatpush1.bf16.msra.mxu0 %v2509_v56  ;;  %2280 = vmatprep.subr.bf16.mxu1 %v2587_v18  ;;  %v2564_v56 = vld [vmem:[#allocation5 + $0x348] ss:$12 sps:$4 sm:$0xff]   ;;  %v2628_v18 = vld [vmem:[#allocation5 + $0x480] ss:$12 sps:$4 sm:$0xff]  }
  0xb0   :  { %1340 = vmatprep.subr.bf16.mxu0 %v2516_v57  ;;  %v2571_v57 = vld [vmem:[#allocation5 + $0x364] ss:$12 sps:$4 sm:$0xff]  }
  0xb2   :  { %2281 = vmatpush3.bf16.msra.mxu1 %v2588_v23  ;;  %v2633_v23 = vld [vmem:[#allocation7 + $0x48] sm:$0xff]  }
  0xb3   :  { %1341 = vmatpush1.bf16.msra.mxu0 %v2514_v60  ;;  %2282 = vmatprep.subr.bf16.mxu1 %v2592_v26  ;;  %v2581_v60 = vld [vmem:[#allocation5 + $0x394] ss:$12 sps:$4 sm:$0xff]   ;;  %v2636_v26 = vld [vmem:[#allocation7 + $0x10] sm:$0xff]  }
  0xb4   :  { %1342 = vmatprep.subr.bf16.mxu0 %v2521_v61  ;;  %v2579_v61 = vld [vmem:[#allocation5 + $0x390] ss:$12 sps:$4 sm:$0xff]  }
  0xb6   :  { %2283 = vmatpush3.bf16.msra.mxu1 %v2593_v37 }
  0xb7   :  { %1343 = vmatpush1.bf16.msra.mxu0 %v2519_v0  ;;  %2332 = vmatprep.subr.bf16.mxu1 %v2792_v48  ;;  %v2591_v0 = vld [vmem:[#allocation5 + $0x3c4] ss:$12 sps:$4 sm:$0xff]  }
  0xb8   :  { %1344 = vmatprep.subr.bf16.mxu0 %v2526_v1  ;;  %v2589_v1 = vld [vmem:[#allocation5 + $0x3c0] ss:$12 sps:$4 sm:$0xff]  }
  0xb9   :  { %1566 = vmatmul.mubr.bf16.vlgmr.msra.gmra.mrb[8].mxu1 %v2942_v44 }
  0xba   :  { %2333 = vmatpush3.bf16.msra.mxu1 %v2612_v45  ;;  %2334 = vmatprep.mubr.msk.bf16.mxu1 %vm2793_vm1, %v2792_v48 }
  0xbb   :  { %1345 = vmatpush1.bf16.msra.mxu0 %v2524_v2  ;;  %v2608_v2 = vld [vmem:[#allocation5 + $0x3dc] ss:$12 sps:$4 sm:$0xff]  }
  0xbc   :  { %1346 = vmatprep.subr.bf16.mxu0 %v2531_v4  ;;  %v2611_v4 = vld [vmem:[#allocation5 + $0x3f4] ss:$12 sps:$4 sm:$0xff]  }
  0xbf   :  { %1347 = vmatpush1.bf16.msra.mxu0 %v2529_v9  ;;  %v2616_v9 = vld [vmem:[#allocation5 + $0x420] ss:$12 sps:$4 sm:$0xff]  }
  0xc0   :  { %1348 = vmatprep.subr.bf16.mxu0 %v2536_v11  ;;  %v2619_v11 = vld [vmem:[#allocation5 + $0x438] ss:$12 sps:$4 sm:$0xff]  }
  0xc1   :  { %2335 = vmatmul.mubr.msk.bf16.vlgmr.msra.gmra.mrb[12].mxu1 %vm1275_vm0, %v2949_v52 }
  0xc3   :  { %1349 = vmatpush1.bf16.msra.mxu0 %v2534_v21  ;;  %v2631_v21 = vld [vmem:[#allocation7 + $0x40] sm:$0xff]  }
  0xc4   :  { %1350 = vmatprep.subr.bf16.mxu0 %v2541_v22  ;;  %v2632_v22 = vld [vmem:[#allocation7] sm:$0xff]   ;;  %2292 = vmatprep.subr.bf16.mxu1 %v2631_v21 }
  0xc5   :  { %2293 = vmatpush3.bf16.msra.mxu1 %v2632_v22 }
  0xc6   :  { %2294 = vmatprep.subr.bf16.mxu1 %v2633_v23 }
  0xc7   :  { %1351 = vmatpush1.bf16.msra.mxu0 %v2539_v30  ;;  %v2640_v30 = vld [vmem:[#allocation7 + $0x20] sm:$0xff]  }
  0xc8   :  { %1352 = vmatprep.subr.bf16.mxu0 %v2546_v33 }
  0xc9   :  { %2295 = vmatpush3.bf16.msra.mxu1 %v2634_v24 }
  0xca   :  { %2296 = vmatprep.subr.bf16.mxu1 %v2635_v25 }
  0xcb   :  { %1353 = vmatpush1.bf16.msra.mxu0 %v2544_v38 }
  0xcc   :  { %1365 = vmatprep.subr.bf16.mxu0 %v2551_v40  ;;  %v2644_v40 = vld [vmem:[#allocation7 + $0x30] sm:$0xff]  }
  0xcd   :  { %2297 = vmatpush3.bf16.msra.mxu1 %v2636_v26 }
  0xce   :  { %1355 = vmatmul.mubr.bf16.vlgmr.msra.gmra.mrb[0].mxu0 %v2931_v54  ;;  %v2574_v54 = vld [vmem:[#allocation5 + $0x378] ss:$12 sps:$4 sm:$0xff]   ;;  %2298 = vmatprep.subr.bf16.mxu1 %v2637_v27 }
  0xcf   :  { %1366 = vmatpush1.bf16.msra.mxu0 %v2549_v46  ;;  %1397 = vmatprep.mubr.bf16.mxu0 %v276_v32  ;;  %v2642_v32 = vld [vmem:[#allocation7 + $0x28] sm:$0xff]  }
  0xd0   :  { %1367 = vmatprep.subr.bf16.mxu0 %v2556_v47 }
  0xd1   :  { %2299 = vmatpush3.bf16.msra.mxu1 %v2638_v28 }
  0xd2   :  { %2300 = vmatprep.subr.bf16.mxu1 %v2639_v29  ;;  %v2647_v29 = vld [vmem:[#allocation7 + $0x80] sm:$0xff]  }
  0xd3   :  { %1368 = vmatpush1.bf16.msra.mxu0 %v2554_v51 }
  0xd4   :  { %1369 = vmatprep.subr.bf16.mxu0 %v2561_v19 }
  0xd5   :  { %2301 = vmatpush3.bf16.msra.mxu1 %v2640_v30  ;;  %v2649_v30 = vld [vmem:[#allocation7 + $0x90] sm:$0xff]  }
  0xd6   :  { %2302 = vmatprep.subr.bf16.mxu1 %v2641_v31  ;;  %v2650_v31 = vld [vmem:[#allocation7 + $0x98] sm:$0xff]  }
  0xd7   :  { %1370 = vmatpush1.bf16.msra.mxu0 %v2559_v53 }
  0xd8   :  { %1371 = vmatprep.subr.bf16.mxu0 %v2566_v55 }
  0xd9   :  { %2303 = vmatpush3.bf16.msra.mxu1 %v2642_v32  ;;  %v2651_v32 = vld [vmem:[#allocation7 + $0xa0] sm:$0xff]  }
  0xda   :  { %2304 = vmatprep.subr.bf16.mxu1 %v2643_v39  ;;  %v2658_v39 = vld [vmem:[#allocation8 + $0x18] sm:$0xff]  }
  0xdb   :  { %1372 = vmatpush1.bf16.msra.mxu0 %v2564_v56 }
  0xdc   :  { %1373 = vmatprep.subr.bf16.mxu0 %v2571_v57 }
  0xdd   :  { %2305 = vmatpush3.bf16.msra.mxu1 %v2644_v40  ;;  %v2659_v40 = vld [vmem:[#allocation8 + $0x20] sm:$0xff]  }
  0xde   :  { %2306 = vmatprep.subr.bf16.mxu1 %v2645_v41  ;;  %v2660_v41 = vld [vmem:[#allocation8 + $0x28] sm:$0xff]  }
  0xdf   :  { %1374 = vmatpush1.bf16.msra.mxu0 %v2569_v58 }
  0xe0   :  { %1375 = vmatprep.subr.bf16.mxu0 %v2576_v59 }
  0xe1   :  { %2307 = vmatpush3.bf16.msra.mxu1 %v2646_v42  ;;  %v2661_v42 = vld [vmem:[#allocation8 + $0x30] sm:$0xff]  }
  0xe2   :  { %2338 = vmatprep.subr.bf16.mxu1 %v2792_v48 }
  0xe3   :  { %1376 = vmatpush1.bf16.msra.mxu0 %v2574_v54 }
  0xe4   :  { %1377 = vmatprep.subr.bf16.mxu0 %v2581_v60 }
  0xe7   :  { %1378 = vmatpush1.bf16.msra.mxu0 %v2579_v61 }
  0xe8   :  { %1379 = vmatprep.subr.bf16.mxu0 %v2586_v62 }
  0xeb   :  { %1380 = vmatpush1.bf16.msra.mxu0 %v2584_v63 }
  0xec   :  { %1381 = vmatprep.subr.bf16.mxu0 %v2591_v0 }
  0xef   :  { %1382 = vmatpush1.bf16.msra.mxu0 %v2589_v1 }
  0xf0   :  { %1383 = vmatprep.subr.bf16.mxu0 %v2608_v2 }
  0xf3   :  { %1384 = vmatpush1.bf16.msra.mxu0 %v2606_v3 }
  0xf4   :  { %1385 = vmatprep.subr.bf16.mxu0 %v2611_v4 }
  0xf7   :  { %1386 = vmatpush1.bf16.msra.mxu0 %v2609_v5 }
  0xf8   :  { %1387 = vmatprep.subr.bf16.mxu0 %v2615_v6 }
  0xfb   :  { %1388 = vmatpush1.bf16.msra.mxu0 %v2613_v7 }
  0xfc   :  { %1389 = vmatprep.subr.bf16.mxu0 %v2618_v8 }
  0xff   :  { %1390 = vmatpush1.bf16.msra.mxu0 %v2616_v9  ;;  %v478_v9 = vsub.s32 0, %v2886_v15 }
 0x100   :  { %1391 = vmatprep.subr.bf16.mxu0 %v2621_v10  ;;  %v482_v10 = vsub.s32 1, %v2886_v15  ;;  %v2648_v15 = vld [vmem:[#allocation7 + $0x88] sm:$0xff]  }
 0x103   :  { %1392 = vmatpush1.bf16.msra.mxu0 %v2619_v11 }
 0x104   :  { %1393 = vmatprep.subr.bf16.mxu0 %v2624_v12 }
 0x107   :  { %1394 = vmatpush1.bf16.msra.mxu0 %v2622_v13 }
 0x108   :  { %1395 = vmatprep.subr.bf16.mxu0 %v2627_v14 }
 0x10b   :  { %1396 = vmatpush1.bf16.msra.mxu0 %v2625_v16 }
 0x10c   :  { %1408 = vmatprep.subr.bf16.mxu0 %v2630_v17 }
 0x10e   :  { %1398 = vmatmul.mubr.bf16.vlgmr.msra.gmra.mrb[0].mxu0 %v2942_v44  ;;  %v474_v44 = vld [vmem:[%s3002_s2] sm:$0x7] }
 0x10f   :  { %1409 = vmatpush1.bf16.msra.mxu0 %v2628_v18  ;;  %1440 = vmatprep.mubr.bf16.mxu0 %v2794_v20  ;;  %v487_v45 = vrot.slane %v474_v44, %v486_v43  ;;  %v479_v11 = vrot.slane %v474_v44, %v478_v9  ;;  %v483_v12 = vrot.slane %v474_v44, %v482_v10  ;;  %v2662_v43 = vld [vmem:[#allocation8 + $0x38] sm:$0xff]  }
 0x11a   :  { %2188 = vmatmul.mubr.msk.bf16.vlgmr.msra.gmra.mrb[0].mxu0 %vm1275_vm0, %v2949_v52 }
 0x14c   :  { %v2240_v33 = vpop.f32.mrb[0].mxu1 }
 0x14d   :  { %v2241_v34 = vpop.f32.mrb[1].mxu1 }
 0x14e   :  { %v2242_v35 = vadd.f32 %v2241_v34, %v2240_v33  ;;  %v2243_v36 = vpop.f32.mrb[2].mxu1  ;;  %v2652_v33 = vld [vmem:[#allocation7 + $0xa8] sm:$0xff]   ;;  %v2653_v34 = vld [vmem:[#allocation7 + $0xb0] sm:$0xff]  }
 0x14f   :  { %v2244_v37 = vpop.f32.mrb[3].mxu1 }
 0x150   :  { %v2245_v38 = vadd.f32 %v2244_v37, %v2243_v36  ;;  %v1486_v46 = vadd.f32 %v2242_v35, %v487_v45  ;;  %v2654_v35 = vld [vmem:[#allocation7 + $0xb8] sm:$0xff]   ;;  %v2655_v36 = vld [vmem:[#allocation8] sm:$0xff]   ;;  %v2656_v37 = vld [vmem:[#allocation8 + $0x8] sm:$0xff]  }
 0x152   :  { %v1489_v50 = vadd.f32 %v2245_v38, %v487_v45  ;;  %v2657_v38 = vld [vmem:[#allocation8 + $0x10] sm:$0xff]  }
 0x16c   :  { %v2262_v47 = vpop.f32.mrb[4].mxu1 }
 0x16d   :  { %v2263_v49 = vpop.f32.mrb[5].mxu1 }
 0x16e   :  { %v2264_v51 = vadd.f32 %v2263_v49, %v2262_v47  ;;  %v2265_v19 = vpop.f32.mrb[6].mxu1 }
 0x16f   :  { %v2266_v52 = vpop.f32.mrb[7].mxu1 }
 0x170   :  { %v1527_v53 = vadd.f32 %v2264_v51, %v1486_v46  ;;  %v2267_v55 = vadd.f32 %v2266_v52, %v2265_v19  ;;  %v2190_v51 = vld [vmem:[%s3004_s4] ss:$0 sm:$0xff] }
 0x172   :  { %v1530_v56 = vadd.f32 %v2267_v55, %v1489_v50 }
 0x18c   :  { %v2284_v57 = vpop.f32.mrb[8].mxu1 }
 0x18d   :  { %v2285_v58 = vpop.f32.mrb[9].mxu1 }
 0x18e   :  { %v2286_v59 = vadd.f32 %v2285_v58, %v2284_v57  ;;  %v2287_v54 = vpop.f32.mrb[10].mxu1 }
 0x18f   :  { %v2288_v60 = vpop.f32.mrb[11].mxu1 }
 0x190   :  { %v2289_v61 = vadd.f32 %v2288_v60, %v2287_v54  ;;  %v1568_v62 = vadd.f32 %v2286_v59, %v1527_v53 }
 0x192   :  { %v1571_v63 = vadd.f32 %v2289_v61, %v1530_v56  ;;  %v2215_v61 = vld [vmem:[%s3006_s6] ss:$0 sm:$0xff] }
 0x194   :  { %v1608_v0 = vpop.f32.mrb[12].mxu1 }
 0x195   :  { %v1609_v1 = vadd.f32 %v1608_v0, %v1568_v62  ;;  %v2336_v2 = vpop.f32.mrb[13].mxu1 }
 0x196   :  { %v1611_v3 = vpop.f32.mrb[14].mxu1 }
 0x197   :  { %v1617_v4 = vmax.f32 %v1609_v1, 0.0  ;;  %v1612_v5 = vadd.f32 %v1611_v3, %v1571_v63  ;;  %v2337_v6 = vpop.f32.mrb[15].mxu1 }
 0x199   :  { %v1620_v7 = vmax.f32 %v1612_v5, 0.0 }
 0x19b   :  { %v1623_v8 = vpack.c.bf16 %v1620_v7, %v1617_v4 }
 0x1ed   :  { %v1442_v13 = vpop.f32.mrb[0].mxu0 }
 0x1ee   :  { %v2378_v14 = vadd.f32 %v1442_v13, %v479_v11  ;;  %v1444_v16 = vpop.f32.mrb[1].mxu0 }
 0x1ef   :  { %v2379_v17 = vadd.f32 %v1444_v16, %v483_v12  ;;  %v1446_v18 = vpop.f32.mrb[2].mxu0 }
 0x1f0   :  { %v2380_v20 = vadd.f32 %v1446_v18, %v479_v11  ;;  %v1448_v21 = vpop.f32.mrb[3].mxu0  ;;  %v1615_v23 = vmax.f32 %v2378_v14, 0.0 }
 0x1f1   :  { %v2381_v22 = vadd.f32 %v1448_v21, %v483_v12  ;;  %v1616_v25 = vmax.f32 %v2379_v17, 0.0 }
 0x1f2   :  { %v1618_v24 = vmax.f32 %v2380_v20, 0.0 }
 0x1f3   :  { %v1619_v26 = vmax.f32 %v2381_v22, 0.0 }
 0x1f4   :  { %v1621_v27 = vpack.c.bf16 %v1618_v24, %v1615_v23 }
 0x1f5   :  { %v1622_v28 = vpack.c.bf16 %v1619_v26, %v1616_v25 }
 0x1f7   :  { %1855 = vmatprep.mubr.bf16.mxu1 %v1622_v28 }
 0x1f8   :  { %1856 = vmatmul.mubr.bf16.vlgmr.msra.gmra.mrb[16].mxu1 %v1621_v27 }
 0x1f9   :  { %2339 = vmatpush3.bf16.msra.mxu1 %v2647_v29  ;;  %2354 = vmatprep.mubr.msk.bf16.mxu1 %vm2793_vm1, %v2792_v48 }
 0x1fa   :  { %2340 = vmatprep.subr.bf16.mxu1 %v2792_v48 }
 0x1fd   :  { %2341 = vmatpush3.bf16.msra.mxu1 %v2648_v15 }
 0x1fe   :  { %2342 = vmatprep.subr.bf16.mxu1 %v2792_v48 }
 0x201   :  { %2343 = vmatpush3.bf16.msra.mxu1 %v2649_v30 }
 0x202   :  { %2344 = vmatprep.subr.bf16.mxu1 %v2792_v48 }
 0x205   :  { %2345 = vmatpush3.bf16.msra.mxu1 %v2650_v31 }
 0x206   :  { %2346 = vmatprep.subr.bf16.mxu1 %v2792_v48 }
 0x209   :  { %2347 = vmatpush3.bf16.msra.mxu1 %v2651_v32 }
 0x20a   :  { %2348 = vmatprep.subr.bf16.mxu1 %v2792_v48 }
 0x20d   :  { %2349 = vmatpush3.bf16.msra.mxu1 %v2652_v33 }
 0x20e   :  { %2350 = vmatprep.subr.bf16.mxu1 %v2792_v48 }
 0x211   :  { %2351 = vmatpush3.bf16.msra.mxu1 %v2653_v34 }
 0x212   :  { %2352 = vmatprep.subr.bf16.mxu1 %v2792_v48 }
 0x215   :  { %2353 = vmatpush3.bf16.msra.mxu1 %v2654_v35 }
 0x216   :  { %2358 = vmatprep.subr.bf16.mxu1 %v2792_v48 }
 0x218   :  { %2355 = vmatmul.mubr.bf16.vlgmr.msra.gmra.mrb[20].mxu1 %v1623_v8 }
 0x219   :  { %2374 = vmatprep.mubr.msk.bf16.mxu1 %vm2793_vm1, %v2792_v48  ;;  %2359 = vmatpush3.bf16.msra.mxu1 %v2655_v36 }
 0x21a   :  { %2360 = vmatprep.subr.bf16.mxu1 %v2792_v48 }
 0x21d   :  { %2361 = vmatpush3.bf16.msra.mxu1 %v2656_v37 }
 0x21e   :  { %2362 = vmatprep.subr.bf16.mxu1 %v2792_v48 }
 0x221   :  { %2363 = vmatpush3.bf16.msra.mxu1 %v2657_v38 }
 0x222   :  { %2364 = vmatprep.subr.bf16.mxu1 %v2792_v48 }
 0x225   :  { %2365 = vmatpush3.bf16.msra.mxu1 %v2658_v39 }
 0x226   :  { %2366 = vmatprep.subr.bf16.mxu1 %v2792_v48 }
 0x229   :  { %2367 = vmatpush3.bf16.msra.mxu1 %v2659_v40 }
 0x22a   :  { %2368 = vmatprep.subr.bf16.mxu1 %v2792_v48 }
 0x22d   :  { %2369 = vmatpush3.bf16.msra.mxu1 %v2660_v41 }
 0x22e   :  { %2370 = vmatprep.subr.bf16.mxu1 %v2792_v48 }
 0x231   :  { %2371 = vmatpush3.bf16.msra.mxu1 %v2661_v42 }
 0x232   :  { %2372 = vmatprep.subr.bf16.mxu1 %v2792_v48 }
 0x235   :  { %2373 = vmatpush3.bf16.msra.mxu1 %v2662_v43 }
 0x2cb   :  { %v2308_v44 = vpop.f32.mrb[16].mxu1 }
 0x2cc   :  { %v2309_v45 = vpop.f32.mrb[17].mxu1 }
 0x2cd   :  { %v2310_v46 = vadd.f32 %v2309_v45, %v2308_v44  ;;  %v2311_v47 = vpop.f32.mrb[18].mxu1 }
 0x2ce   :  { %v2312_v49 = vpop.f32.mrb[19].mxu1 }
 0x2cf   :  { %v2313_v50 = vadd.f32 %v2312_v49, %v2311_v47  ;;  %v1858_v19 = vadd.f32 %v2310_v46, %v2190_v51 }
 0x2d1   :  { %v1861_v56 = vadd.f32 %v2313_v50, %v2190_v51 }
 0x2eb   :  { %v1898_v52 = vpop.f32.mrb[20].mxu1 }
 0x2ec   :  { %v1899_v53 = vadd.f32 %v1898_v52, %v1858_v19  ;;  %v2356_v55 = vpop.f32.mrb[21].mxu1 }
 0x2ed   :  { %v1901_v57 = vpop.f32.mrb[22].mxu1 }
 0x2ee   :  { %v1902_v58 = vadd.f32 %v1901_v57, %v1861_v56  ;;  %v2357_v48 = vpop.f32.mrb[23].mxu1  ;;  %v1905_v59 = vmax.f32 %v1899_v53, 0.0 }
 0x2f0   :  { %v1906_v54 = vmax.f32 %v1902_v58, 0.0 }
 0x2f2   :  { %v1907_v60 = vpack.c.bf16 %v1906_v54, %v1905_v59 }
 0x2f4   :  { %2375 = vmatmul.mubr.bf16.vlgmr.msra.gmra.mrb[24].mxu1 %v1907_v60 }
 0x3c7   :  { %v2013_v62 = vpop.f32.mrb[24].mxu1 }
 0x3c8   :  { %v2014_v63 = vadd.f32 %v2215_v61, %v2013_v62  ;;  %v2376_v0 = vpop.f32.mrb[25].mxu1 }
 0x3c9   :  { %v2016_v1 = vpop.f32.mrb[26].mxu1 }
 0x3ca   :  { %2020 = vst [vmem:[#allocation10] sm:$0xff] %v2014_v63  ;;  %v2017_v2 = vadd.f32 %v2215_v61, %v2016_v1  ;;  %v2377_v3 = vpop.f32.mrb[27].mxu1 }
 0x3cc   :  { %2021 = vst [vmem:[#allocation10 + $0x8] sm:$0xff] %v2017_v2 }
 0x3cd   :  { %2026 = vsyncadd [#allocation4], 224  ;;  %s2795_s4 = smov [#allocation10]  }
 0x3ce   :  { %s2027_s10 = sshll.u32 %s2795_s4, 4  ;;  %s2028_s10 = int_to_ptr.vmem [resolvable:$true] %s2027_s10 }
 0x3cf   :  { %s2751_s11 = scalar_lea.vmem %s2028_s10, 32  ;;  %s2755_s12 = scalar_lea.vmem %s2028_s10, 256 }
 0x3d0   :  { %p2752_p4 = scmp.ne.s32.totalorder %s2028_s10, %s2751_s11  ;;  %p2756_p5 = scmp.lt.s32.totalorder %s2028_s10, %s2028_s10 }
 0x3d1   :  { %p2757_p6 = scmp.lt.s32.totalorder %s2755_s12, %s2751_s11 }
 0x3d3   :  { %p2758_p7 = por %p2757_p6, %p2756_p5 }
 0x3d5   :  { %p2759_p8 = pnand %p2758_p7, %p2752_p4 }
 0x3d7   :  { %2762 = shalt.err (!%p2759_p8)
}
 0x3d8   :  { %s2763_s14 = scalar_lea.hbm %s3007_s7, 32 }
 0x3d9   :  { %p2764_p9 = scmp.ne.s32.totalorder %s3007_s7, %s2763_s14  ;;  %p2767_p10 = scmp.lt.u32.totalorder %s2763_s14, %s3007_s7 }
 0x3db   :  { %p2769_p11 = pnand %p2767_p10, %p2764_p9 }
 0x3dd   :  { %2772 = shalt.err (!%p2769_p11)
}
 0x3de   :  { %s2796_s18 = smov 32   ;;  %s2797_s19 = smov 2  }
 0x3df   :  { %2033 = dma.vmem_to_hbm [thread:$0]  %s2028_s10, 32, %s3007_s7, [#allocation4], %s2796_s18, %s2796_s18, %s2797_s19  }
 0x3e0   :  { %2779 = dma.done.wait [#allocation4], 256  }
 0x3e1   :  { %2780 = vsyncadd [#allocation4], 4294967040 }
 0x3e2   :  { %2037 = vsyncpa [#allocation3], 1 }
 0x3e3   :  { %2038 = vsyncpa [#allocation6], 1 }
 0x3e4   :  { %2039 = vsyncpa [#allocation9], 1 }
 0x3e5   :  { %2040 = vsyncpa [#allocation4], 1 }

</bundles_post_ra>
